<compile_context>
chip_gen: v5e
topology: v5e:2x2
jax: 0.10.0
libtpu: 0.0.40
codegen_flags: <defaults>
</compile_context>

<pallas_src>
import functools
import math

import jax
import jax.numpy as jnp
from jax.experimental import pallas as pl
from jax.experimental.pallas import tpu as pltpu


# ---------------------------------------------------------------------------
# Kernels (pure elementwise: add pe broadcast over batch, then inverted dropout)
# ---------------------------------------------------------------------------
def _pe_add_kernel(x_ref, pe_ref, o_ref, *, ts, pe_is_resident):
    if pe_is_resident:
        # pe_ref holds the full (S, 1, H) table resident in VMEM (DMA'd once,
        # grid-invariant index_map); slice this tile's rows. Broadcasts over
        # the batch (sublane) dim.
        start = pl.multiple_of(pl.program_id(0) * ts, ts)
        pe = pe_ref[pl.ds(start, ts), :, :]
    else:
        pe = pe_ref[...]  # pe block matches the x block exactly (flattened path)
    o_ref[...] = x_ref[...] + pe


def _pe_add_dropout_kernel(x_ref, pe_ref, mask_ref, o_ref, *,
                           ts, pe_is_resident, scale):
    if pe_is_resident:
        start = pl.multiple_of(pl.program_id(0) * ts, ts)
        pe = pe_ref[pl.ds(start, ts), :, :]
    else:
        pe = pe_ref[...]
    y = x_ref[...] + pe
    # Inverted dropout: mask is {0, 1} in x.dtype, scale = 1/keep_prob.
    o_ref[...] = y * (mask_ref[...] * scale)


# ---------------------------------------------------------------------------
# Parameter setup (deterministic, matches nn.Module.__init__)
# ---------------------------------------------------------------------------
def make_positional_encoding_table(hidden, max_len=256, dtype=jnp.float32):
    position = jnp.arange(max_len, dtype=jnp.float32)[:, None]            # (L, 1)
    div_term = jnp.exp(
        jnp.arange(0, hidden, 2, dtype=jnp.float32)
        * (-math.log(10000.0) / hidden)
    )                                                                      # (H/2,)
    angles = position * div_term                                           # (L, H/2)
    pe = jnp.zeros((max_len, 1, hidden), dtype=jnp.float32)
    pe = pe.at[:, 0, 0::2].set(jnp.sin(angles))
    pe = pe.at[:, 0, 1::2].set(jnp.cos(angles))
    return pe.astype(dtype)


# ---------------------------------------------------------------------------
# Tiling heuristics
# ---------------------------------------------------------------------------
def _choose_seq_tile(S, row_bytes, *, align=1, target_block_bytes=1 << 20):
    """Pick a seq tile so each x/mask/out block is ~<= 1 MiB.

    With 2x double-buffering of {x, mask, out} that stays well under v5e's
    16 MiB default scoped VMEM and far under v6e/v7x limits, while still giving
    >= 8 grid steps (so BlockSpec double-buffering overlaps DMA with compute)
    whenever there is enough data to be worth pipelining.
    """
    row_bytes = max(int(row_bytes), 1)
    ts = max(1, min(S, target_block_bytes // row_bytes))
    # Prefer >= 8 grid steps, but never shrink blocks below ~256 KiB to get them.
    cap = max(1, S // 8)
    if cap * row_bytes >= (256 << 10):
        ts = min(ts, cap)
    # Respect sublane alignment (flattened 2-D path) and shrink to a divisor of
    # S so every block is full -> unmasked, aligned DMA windows.
    ts = max(align, (ts // align) * align)
    while ts > align and S % ts != 0:
        ts -= align
    if S % ts != 0:
        ts = S  # block dim == full array dim is always legal and correct
    return ts


# ---------------------------------------------------------------------------
# Wrapper
# ---------------------------------------------------------------------------
def positional_encoding_forward(x, pe, *, dropout_p=0.1, training=False,
                                rng_key=None, donate_x=False):
    """x: [seq_len, batch, hidden];  pe: [max_len, 1, hidden] buffer."""
    S, B, H = x.shape
    # Slice to seq_len and pre-cast to x.dtype once (halves pe DMA bytes for
    # bf16 inputs and removes a per-element cast from the kernel).
    pe_s = jax.lax.slice(pe, (0, 0, 0), (S, 1, H)).astype(x.dtype)

    itemsize = jnp.dtype(x.dtype).itemsize
    row_bytes = B * H * itemsize
    use_dropout = bool(training) and float(dropout_p) > 0.0

    # Lane-density guard: the block's last two dims map to (sublane, lane).
    # If H is lane-sparse (H % 128 != 0) but B*H is lane-dense, flatten to
    # [S, B*H] so the output store is an unmasked, lane-dense vst (pe gets
    # broadcast over batch in the wrapper for this path only).
    flatten = (H % 128 != 0) and ((B * H) % 128 == 0)

    if flatten:
        x_k = x.reshape(S, B * H)
        pe_k = jnp.broadcast_to(pe_s, (S, B, H)).reshape(S, B * H)
        ts = _choose_seq_tile(S, row_bytes, align=8)
        data_spec = pl.BlockSpec((ts, B * H), lambda i: (i, 0))
        pe_spec = pl.BlockSpec((ts, B * H), lambda i: (i, 0))
        out_shape = jax.ShapeDtypeStruct((S, B * H), x.dtype)
        pe_is_resident = False
    else:
        x_k = x
        pe_k = pe_s
        ts = _choose_seq_tile(S, row_bytes, align=1)
        data_spec = pl.BlockSpec((ts, B, H), lambda i: (i, 0, 0))
        # pe is tiny (<= max_len * H * itemsize): keep it grid-invariant so it
        # is DMA'd once and stays resident instead of a sliver per grid step.
        pe_spec = pl.BlockSpec((S, 1, H), lambda i: (0, 0, 0))
        out_shape = jax.ShapeDtypeStruct((S, B, H), x.dtype)
        pe_is_resident = True

    grid = (S // ts,)
    # Tiles are fully independent -> "parallel" lets Mosaic shard the seq grid
    # across both TensorCores on v7x; free/no-op on v5e/v6e.
    cparams = pltpu.CompilerParams(dimension_semantics=("parallel",))
    aliases = {0: 0} if donate_x else {}

    if not use_dropout:
        kernel = functools.partial(_pe_add_kernel, ts=ts,
                                   pe_is_resident=pe_is_resident)
        y = pl.pallas_call(
            kernel,
            grid=grid,
            in_specs=[data_spec, pe_spec],
            out_specs=data_spec,
            out_shape=out_shape,
            input_output_aliases=aliases,
            compiler_params=cparams,
        )(x_k, pe_k)
    else:
        keep_prob = 1.0 - float(dropout_p)
        if rng_key is None:
            rng_key = jax.random.PRNGKey(0)
        # TODO(synk): on real TPU hardware pltpu.prng_seed/prng_random_bits could
        # generate this mask on-chip (saving one HBM read), but those primitives
        # do not lower on CPU/interpret backends, so the mask is drawn here.
        keep = jax.random.bernoulli(rng_key, p=keep_prob, shape=x_k.shape)
        mask = keep.astype(x.dtype)  # {0, 1}; bernoulli+cast fuse into one XLA op
        kernel = functools.partial(_pe_add_dropout_kernel, ts=ts,
                                   pe_is_resident=pe_is_resident,
                                   scale=1.0 / keep_prob)
        y = pl.pallas_call(
            kernel,
            grid=grid,
            in_specs=[data_spec, pe_spec, data_spec],
            out_specs=data_spec,
            out_shape=out_shape,
            input_output_aliases=aliases,
            compiler_params=cparams,
        )(x_k, pe_k, mask)

    if flatten:
        y = y.reshape(S, B, H)
    return y


# ---------------------------------------------------------------------------
# Demo / smoke test
# ---------------------------------------------------------------------------
if __name__ == "__main__":
    SEQ, BATCH, HIDDEN = 8, 2, 32
    MAX_LEN = 256
    DROPOUT_P = 0.1

    key = jax.random.PRNGKey(0)
    x = jax.random.normal(key, (SEQ, BATCH, HIDDEN), dtype=jnp.float32)
    pe = make_positional_encoding_table(HIDDEN, max_len=MAX_LEN)

    # Eval-mode forward (dropout is identity): y = x + pe[:seq_len]
    y_eval = positional_encoding_forward(x, pe, dropout_p=DROPOUT_P,
                                         training=False)
    y_eval = jax.block_until_ready(y_eval)

    y_ref = x + pe[:SEQ]
    assert y_eval.shape == (SEQ, BATCH, HIDDEN)
    assert jnp.allclose(y_eval, y_ref, atol=1e-6), "eval-mode mismatch vs ref"

    # Training-mode forward: inverted dropout applied to (x + pe).
    y_train = positional_encoding_forward(
        x, pe, dropout_p=DROPOUT_P, training=True,
        rng_key=jax.random.PRNGKey(1234))
    y_train = jax.block_until_ready(y_train)
    assert y_train.shape == (SEQ, BATCH, HIDDEN)

    # Every element must be either dropped (exactly 0) or (x + pe) / keep_prob.
    keep_prob = 1.0 - DROPOUT_P
    scaled_ref = y_ref / keep_prob
    ok = jnp.isclose(y_train, 0.0, atol=1e-7) | jnp.isclose(
        y_train, scaled_ref, rtol=1e-5, atol=1e-6)
    assert bool(jnp.all(ok)), "training-mode dropout semantics mismatch"

    print("KERNEL_OK")
</pallas_src>

<mosaic_0001>
module attributes {stable_mosaic.version = 11 : i64} {
  func.func @_pe_add_kernel(%arg0: i32, %arg1: memref<8x2x32xf32, #tpu.memory_space<vmem>>, %arg2: memref<8x1x32xf32, #tpu.memory_space<vmem>>, %arg3: memref<8x2x32xf32, #tpu.memory_space<vmem>>) attributes {dimension_semantics = [#tpu.dimension_semantics<parallel>], iteration_bounds = array<i64: 1>, scalar_prefetch = 0 : i64, scratch_operands = 0 : i64, tpu.core_type = #tpu.core_type<tc>, window_params = [{transform_indices = @transform_0, window_bounds = array<i64: 8, 2, 32>}, {pipeline_mode = #tpu.pipeline_mode<synchronous>, transform_indices = @transform_1, window_bounds = array<i64: 8, 1, 32>}, {transform_indices = @transform_2, window_bounds = array<i64: 8, 2, 32>}]} {
    %c8_i32 = arith.constant 8 : i32
    %0 = arith.muli %arg0, %c8_i32 : i32
    %1 = tpu.assume_multiple %0, 8 : i32
    %2 = arith.index_cast %1 : i32 to index
    %c0 = arith.constant 0 : index
    %c0_0 = arith.constant 0 : index
    %3 = vector.load %arg2[%2, %c0, %c0_0] : memref<8x1x32xf32, #tpu.memory_space<vmem>>, vector<8x1x32xf32>
    %c0_1 = arith.constant 0 : index
    %c0_2 = arith.constant 0 : index
    %c0_3 = arith.constant 0 : index
    %4 = vector.load %arg1[%c0_1, %c0_2, %c0_3] : memref<8x2x32xf32, #tpu.memory_space<vmem>>, vector<8x2x32xf32>
    %5 = vector.broadcast %3 : vector<8x1x32xf32> to vector<8x2x32xf32>
    %6 = arith.addf %4, %5 : vector<8x2x32xf32>
    %c0_4 = arith.constant 0 : index
    %c0_5 = arith.constant 0 : index
    %c0_6 = arith.constant 0 : index
    %7 = vector.load %arg3[%c0_4, %c0_5, %c0_6] : memref<8x2x32xf32, #tpu.memory_space<vmem>>, vector<8x2x32xf32>
    tpu.vector_store %arg3[%c0_4, %c0_5, %c0_6], %6 {strides = array<i32>} : memref<8x2x32xf32, #tpu.memory_space<vmem>>, vector<8x2x32xf32>,
    return
  }
  func.func @transform_0(%arg0: i32) -> (i32, i32, i32) {
    %c0_i32 = arith.constant 0 : i32
    %c0_i32_0 = arith.constant 0 : i32
    %c0_i32_1 = arith.constant 0 : i32
    return %arg0, %c0_i32, %c0_i32_0 : i32, i32, i32
  }
  func.func @transform_1(%arg0: i32) -> (i32, i32, i32) {
    %c0_i32 = arith.constant 0 : i32
    %c0_i32_0 = arith.constant 0 : i32
    %c0_i32_1 = arith.constant 0 : i32
    %c0_i32_2 = arith.constant 0 : i32
    return %c0_i32, %c0_i32_0, %c0_i32_1 : i32, i32, i32
  }
  func.func @transform_2(%arg0: i32) -> (i32, i32, i32) {
    %c0_i32 = arith.constant 0 : i32
    %c0_i32_0 = arith.constant 0 : i32
    %c0_i32_1 = arith.constant 0 : i32
    return %arg0, %c0_i32, %c0_i32_0 : i32, i32, i32
  }
}

</mosaic_0001>

<bundles_post_ra>
// kernel: tpu_custom_call.1
= control target key start
LH: loop header
LB: loop body
LE: loop exit
PB: predicated region body
PF: predicated region fallthrough
CT: control target
= control target key end

     0   :  { %7 = vsyncpa [#allocation3], 0  ;;  %s268_s0 = inlined_call_operand.hbm [shape: f32[8,2,32], index: 0, kind: input, shape index: {}]   ;;  %s269_s1 = inlined_call_operand.hbm [shape: f32[8,1,32], index: 1, kind: input, shape index: {}]   ;;  %s270_s2 = inlined_call_operand.hbm [shape: f32[8,2,32], index: 2, kind: output, shape index: {}]  }
   0x1   :  { %8 = vsyncpa [#allocation6], 0 }
   0x2   :  { %9 = vsyncpa [#allocation4], 0  ;;  %s14_s11 = sshll.u32 %s268_s0, 4  ;;  %s216_s12 = smov [#allocation2]   ;;  %s15_s11 = int_to_ptr.hbm [resolvable:$true] %s14_s11 }
   0x3   :  { %s16_s13 = sshll.u32 %s216_s12, 4  ;;  %s27_s16 = sshll.u32 %s269_s1, 4  ;;  %s17_s13 = int_to_ptr.vmem [resolvable:$true] %s16_s13  ;;  %s28_s16 = int_to_ptr.hbm [resolvable:$true] %s27_s16 }
   0x4   :  { %s217_s17 = smov 32   ;;  %s218_s18 = smov 2  }
   0x5   :  { %22 = dma.hbm_to_vmem [thread:$0]  %s15_s11, 256, %s17_s13, [#allocation3], %s217_s17, %s217_s17, %s218_s18  }
   0x6   :  { %s219_s19 = smov [#allocation5]   ;;  %s220_s21 = smov 16  }
   0x7   :  { %s29_s20 = sshll.u32 %s219_s19, 4  ;;  %s221_s0 = smov 1   ;;  %s30_s20 = int_to_ptr.vmem [resolvable:$true] %s29_s20 }
   0x8   :  { %35 = dma.hbm_to_vmem [thread:$0]  %s28_s16, 128, %s30_s20, [#allocation6], %s220_s21, %s220_s21, %s221_s0  }
   0x9   :  { %210 = dma.done.wait [#allocation3], 256  }
   0xa   :  { %211 = vsyncadd [#allocation3], 4294967040 }
   0xb   :  { %212 = dma.done.wait [#allocation6], 128  }
   0xc   :  { %213 = vsyncadd [#allocation6], 4294967168  ;;  %vm94_vm0 = vcmask 254976   ;;  %s222_s22 = smov [#allocation7]   ;;  %s109_s25 = sshll.u32 %s270_s2, 4  ;;  %s110_s25 = int_to_ptr.hbm [resolvable:$true] %s109_s25 }
   0xd   :  { %s247_s1 = sshll.u32 %s222_s22, 4  ;;  %v54_v0 = vld [vmem:[#allocation2] sm:$0x3]  ;;  %v130_v1 = vld [vmem:[#allocation5] ss:$0 sm:$0xff]  ;;  %s108_s1 = int_to_ptr.vmem [resolvable:$true] %s247_s1 }
   0xe   :  { %v55_v2 = vld [vmem:[#allocation2 + $0x2] sm:$0x3]  ;;  %v131_v3 = vld [vmem:[#allocation5 + $0x1] ss:$0 sm:$0xff]  ;;  %v86_v4 = vadd.f32 %v130_v1, %v54_v0  ;;  %v56_v5 = vld [vmem:[#allocation2 + $0x4] sm:$0x3] }
   0xf   :  { %v132_v6 = vld [vmem:[#allocation5 + $0x2] ss:$0 sm:$0xff]  ;;  %v87_v7 = vadd.f32 %v131_v3, %v55_v2  ;;  %v57_v8 = vld [vmem:[#allocation2 + $0x6] sm:$0x3]  ;;  %v133_v9 = vld [vmem:[#allocation5 + $0x3] ss:$0 sm:$0xff] }
  0x10   :  { %95 = vst.msk [vmem:[#allocation7] sm:$0x3] %vm94_vm0, %v86_v4  ;;  %v88_v10 = vadd.f32 %v132_v6, %v56_v5  ;;  %v58_v11 = vld [vmem:[#allocation2 + $0x8] sm:$0x3]  ;;  %v89_v12 = vadd.f32 %v133_v9, %v57_v8  ;;  %v134_v13 = vld [vmem:[#allocation5 + $0x4] ss:$0 sm:$0xff] }
  0x11   :  { %96 = vst.msk [vmem:[#allocation7 + $0x2] sm:$0x3] %vm94_vm0, %v87_v7  ;;  %v59_v14 = vld [vmem:[#allocation2 + $0xa] sm:$0x3]  ;;  %v135_v15 = vld [vmem:[#allocation5 + $0x5] ss:$0 sm:$0xff]  ;;  %v90_v16 = vadd.f32 %v134_v13, %v58_v11 }
  0x12   :  { %97 = vst.msk [vmem:[#allocation7 + $0x4] sm:$0x3] %vm94_vm0, %v88_v10  ;;  %v60_v17 = vld [vmem:[#allocation2 + $0xc] sm:$0x3]  ;;  %v91_v18 = vadd.f32 %v135_v15, %v59_v14  ;;  %v136_v19 = vld [vmem:[#allocation5 + $0x6] ss:$0 sm:$0xff] }
  0x13   :  { %98 = vst.msk [vmem:[#allocation7 + $0x6] sm:$0x3] %vm94_vm0, %v89_v12  ;;  %v61_v20 = vld [vmem:[#allocation2 + $0xe] sm:$0x3]  ;;  %v137_v21 = vld [vmem:[#allocation5 + $0x7] ss:$0 sm:$0xff]  ;;  %v92_v22 = vadd.f32 %v136_v19, %v60_v17 }
  0x14   :  { %99 = vst.msk [vmem:[#allocation7 + $0x8] sm:$0x3] %vm94_vm0, %v90_v16  ;;  %v93_v23 = vadd.f32 %v137_v21, %v61_v20 }
  0x15   :  { %100 = vst.msk [vmem:[#allocation7 + $0xa] sm:$0x3] %vm94_vm0, %v91_v18 }
  0x16   :  { %101 = vst.msk [vmem:[#allocation7 + $0xc] sm:$0x3] %vm94_vm0, %v92_v22 }
  0x17   :  { %102 = vst.msk [vmem:[#allocation7 + $0xe] sm:$0x3] %vm94_vm0, %v93_v23 }
  0x18   :  { %115 = dma.vmem_to_hbm [thread:$0]  %s108_s1, 256, %s110_s25, [#allocation4], %s217_s17, %s217_s17, %s218_s18  }
  0x19   :  { %214 = dma.done.wait [#allocation4], 256  }
  0x1a   :  { %215 = vsyncadd [#allocation4], 4294967040 }
  0x1b   :  { %120 = vsyncpa [#allocation3], 1 }
  0x1c   :  { %121 = vsyncpa [#allocation6], 1 }
  0x1d   :  { %122 = vsyncpa [#allocation4], 1 }

</bundles_post_ra>
